<compile_context>
chip_gen: v7x
topology: tpu7x:2x2x1
jax: 0.10.0
libtpu: 0.0.40
codegen_flags: <defaults>
</compile_context>

<pallas_src>
import jax
import jax.numpy as jnp
from jax import lax
from jax.experimental import pallas as pl
from jax.experimental.pallas import tpu as pltpu


# --------------------------------------------------------------------------
# Kernel bodies
# --------------------------------------------------------------------------
def _resident_gather_kernel(ids_ref, table_hbm_ref, out_ref, table_vmem, load_sem):
    """Gather rows from a VMEM-resident copy of the table.

    ids_ref:       (N_pad,) int32 in SMEM (scalar prefetch)
    table_hbm_ref: (V, D) in HBM (memory_space=pl.ANY)
    out_ref:       (R, D) VMEM output block
    table_vmem:    (V, D) VMEM scratch -- table, loaded once, single-buffered
    load_sem:      (1,) DMA semaphore for the one-time table load
    """
    i = pl.program_id(0)
    rows = out_ref.shape[0]

    # One-time table load into scratch; scratch persists across grid steps.
    @pl.when(i == 0)
    def _():
        cp = pltpu.make_async_copy(table_hbm_ref, table_vmem, load_sem.at[0])
        cp.start()
        cp.wait()

    base = i * rows
    # Dynamic row loads (second-minor offset), static store offsets.
    # O(R*D) work per block -- no one-hot / MXU, no (R, V) intermediates.
    for r in range(rows):
        row = ids_ref[base + r]
        out_ref[pl.ds(r, 1), :] = table_vmem[pl.ds(row, 1), :]


def _dma_gather_kernel(n_ref, ids_ref, table_hbm_ref, out_ref, vbuf, sems):
    """HBM row gather with cross-step double buffering (large tables).

    n_ref:         (1,) int32 in SMEM  -- true (unpadded) number of rows
    ids_ref:       (N_pad,) int32 in SMEM (scalar prefetch)
    table_hbm_ref: (V, D) in HBM (memory_space=pl.ANY)
    out_ref:       (R, D) VMEM output block
    vbuf:          (2, R, D) VMEM scratch -- double buffer for row fetches
    sems:          (2,) DMA semaphores, one per buffer slot (shared by all
                   row copies of that slot's block)
    """
    i = pl.program_id(0)
    nblocks = pl.num_programs(0)
    rows = out_ref.shape[0]
    n = n_ref[0]

    def rows_in_block(b):
        # Skip padding rows of the last block entirely (no junk HBM fetches).
        return jnp.minimum(rows, n - b * rows)

    def issue_block(b, slot):
        def body(r, c):
            row = ids_ref[b * rows + r]
            pltpu.make_async_copy(
                table_hbm_ref.at[row], vbuf.at[slot, r], sems.at[slot]
            ).start()
            return c
        lax.fori_loop(0, rows_in_block(b), body, 0)

    def wait_block(b, slot):
        def body(r, c):
            # Wait descriptor only needs the right size (one table row).
            pltpu.make_async_copy(
                table_hbm_ref.at[0], vbuf.at[slot, 0], sems.at[slot]
            ).wait()
            return c
        lax.fori_loop(0, rows_in_block(b), body, 0)

    # Prime the pipeline: block 0's fetches are issued at step 0.
    @pl.when(i == 0)
    def _():
        issue_block(0, 0)

    # Cross-step overlap: start block i+1's row fetches before waiting on ours.
    @pl.when(i + 1 < nblocks)
    def _():
        issue_block(i + 1, (i + 1) % 2)

    wait_block(i, i % 2)
    out_ref[...] = vbuf[i % 2]


# --------------------------------------------------------------------------
# Wrapper
# --------------------------------------------------------------------------
def _round_up(x: int, m: int) -> int:
    return (x + m - 1) // m * m


def _vmem_capacity_bytes() -> int:
    try:
        return int(pltpu.get_tpu_info().vmem_capacity_bytes)
    except Exception:
        return 64 * 1024 * 1024  # conservative: v7x per-core VMEM


def embedding_lookup(
    table: jax.Array,
    ids: jax.Array,
    *,
    block_rows: int | None = None,
    force_dma_gather: bool = False,
    resident_table_max_bytes: int | None = None,
) -> jax.Array:
    """y[i, :] = table[ids[i], :] via a Pallas TPU kernel."""
    V, D = table.shape
    (N,) = ids.shape
    if N == 0:
        return jnp.zeros((0, D), table.dtype)

    # Bounds safety: clamp untrusted indices to valid rows (note: silently
    # clamps out-of-range ids instead of erroring like torch.nn.Embedding).
    ids = jnp.clip(ids.astype(jnp.int32), 0, V - 1)

    itemsize = table.dtype.itemsize
    d_pad = _round_up(D, 128)
    table_vmem_bytes = _round_up(V, 8) * d_pad * itemsize  # padded VMEM footprint

    vmem_capacity = _vmem_capacity_bytes()
    if resident_table_max_bytes is None:
        # Generation-aware budget: ~1/8 of this chip's VMEM for the resident
        # table (single-buffered in scratch, so this is its full cost).
        resident_table_max_bytes = vmem_capacity // 8
    use_resident = (not force_dma_gather) and table_vmem_bytes <= resident_table_max_bytes

    # Rows per grid step: multiple of 8 (f32 sublane tile).  The resident path
    # unrolls its per-row copies, so keep it moderate; the HBM-DMA path wants
    # many row fetches in flight per step.
    if block_rows is None:
        block_rows = 128 if use_resident else 256
    R = _round_up(min(block_rows, _round_up(N, 8)), 8)
    N_pad = _round_up(N, R)
    if N_pad != N:
        ids = jnp.concatenate([ids, jnp.zeros((N_pad - N,), jnp.int32)])
    num_blocks = N_pad // R

    out_block_bytes = R * d_pad * itemsize
    cost = pl.CostEstimate(
        flops=0,
        transcendentals=0,
        bytes_accessed=(table_vmem_bytes if use_resident else N_pad * D * itemsize)
        + N_pad * D * itemsize      # output written
        + N_pad * 4,                # indices
    )

    if use_resident:
        vmem_need = table_vmem_bytes + 2 * out_block_bytes + (4 << 20)
    else:
        vmem_need = 2 * R * d_pad * itemsize + 2 * out_block_bytes + (4 << 20)
    cparams = pltpu.CompilerParams(
        # Both paths prime state at program_id == 0 (resident table load /
        # first block's DMAs): the grid must run sequentially on one core.
        # This also keeps the resident table in only ONE per-core VMEM on v7x.
        dimension_semantics=("arbitrary",),
        vmem_limit_bytes=int(min(vmem_capacity, vmem_need)),
    )

    if use_resident:
        out = pl.pallas_call(
            _resident_gather_kernel,
            out_shape=jax.ShapeDtypeStruct((N_pad, D), table.dtype),
            grid_spec=pltpu.PrefetchScalarGridSpec(
                num_scalar_prefetch=1,                          # ids -> SMEM
                grid=(num_blocks,),
                in_specs=[pl.BlockSpec(memory_space=pl.ANY)],   # table stays in HBM
                out_specs=pl.BlockSpec((R, D), lambda i, ids_s: (i, 0)),
                scratch_shapes=[
                    pltpu.VMEM((V, D), table.dtype),            # resident table (1x)
                    pltpu.SemaphoreType.DMA((1,)),
                ],
            ),
            compiler_params=cparams,
            cost_estimate=cost,
        )(ids, table)
    else:
        # TODO(synk): for very large N, ids may exceed SMEM capacity (1D SMEM
        # pads to next_pow2(4N)); chunk the call at the wrapper level then.
        n_arr = jnp.array([N], jnp.int32)
        out = pl.pallas_call(
            _dma_gather_kernel,
            out_shape=jax.ShapeDtypeStruct((N_pad, D), table.dtype),
            grid_spec=pltpu.PrefetchScalarGridSpec(
                num_scalar_prefetch=2,                          # n, ids -> SMEM
                grid=(num_blocks,),
                in_specs=[pl.BlockSpec(memory_space=pl.ANY)],   # table stays in HBM
                out_specs=pl.BlockSpec((R, D), lambda i, n_s, ids_s: (i, 0)),
                scratch_shapes=[
                    pltpu.VMEM((2, R, D), table.dtype),         # double buffer
                    pltpu.SemaphoreType.DMA((2,)),              # one sem per slot
                ],
            ),
            compiler_params=cparams,
            cost_estimate=cost,
        )(n_arr, ids, table)

    return out[:N] if N_pad != N else out


class FeatEmbed:
    """JAX/Pallas port of dhgas.models.HLinear.FeatEmbed."""

    def __init__(self, num_nodes_per_type: dict, emb_types, embed_dim: int, key):
        self.embed_dim = embed_dim
        self.tables = {}
        for tp in emb_types:
            key, sub = jax.random.split(key)
            # torch.nn.Embedding default init: N(0, 1)
            self.tables[tp] = jax.random.normal(
                sub, (num_nodes_per_type[tp], embed_dim), dtype=jnp.float32
            )

    def __call__(self, x_dict: dict) -> dict:
        y_dict = {}
        for tp, x in x_dict.items():
            if tp in self.tables:
                y_dict[tp] = embedding_lookup(self.tables[tp], x)
            else:
                y_dict[tp] = x
        return y_dict


# --------------------------------------------------------------------------
# Demo / correctness check
# --------------------------------------------------------------------------
if __name__ == "__main__":
    key = jax.random.PRNGKey(0)

    embed_dim = 128
    emb_types = ["author", "paper"]
    num_nodes_per_type = {"author": 16, "paper": 32}

    k_model, k_a, k_p, k_v, k_m1, k_m2 = jax.random.split(key, 6)
    model = FeatEmbed(num_nodes_per_type, emb_types, embed_dim, k_model)

    x_dict = {
        # integer node indices for embedded types (author count is NOT a
        # multiple of 8 to exercise the padding path)
        "author": jax.random.randint(
            k_a, (10,), 0, num_nodes_per_type["author"], dtype=jnp.int32
        ),
        "paper": jax.random.randint(
            k_p, (8,), 0, num_nodes_per_type["paper"], dtype=jnp.int32
        ),
        # a type without an embedding table -> passthrough
        "venue": jax.random.normal(k_v, (4, embed_dim), dtype=jnp.float32),
    }

    y_dict = model(x_dict)
    y_dict = jax.tree_util.tree_map(jax.block_until_ready, y_dict)

    ok = True
    for tp in emb_types:
        ref = jnp.take(model.tables[tp], x_dict[tp], axis=0)
        ok = ok and bool(jnp.allclose(y_dict[tp], ref, atol=1e-6))
        ok = ok and y_dict[tp].shape == (x_dict[tp].shape[0], embed_dim)
    ok = ok and bool(jnp.array_equal(y_dict["venue"], x_dict["venue"]))

    # Multi-block resident path (table loaded once at step 0, reused after).
    ids_res = jax.random.randint(k_m1, (20,), 0, 16, dtype=jnp.int32)
    y_res = jax.block_until_ready(
        embedding_lookup(model.tables["author"], ids_res, block_rows=8)
    )
    ok = ok and bool(
        jnp.allclose(y_res, jnp.take(model.tables["author"], ids_res, axis=0), atol=1e-6)
    )

    # HBM-DMA gather path, single block (used for large tables).
    y_dma1 = jax.block_until_ready(
        embedding_lookup(model.tables["paper"], x_dict["paper"], force_dma_gather=True)
    )
    ok = ok and bool(
        jnp.allclose(
            y_dma1, jnp.take(model.tables["paper"], x_dict["paper"], axis=0), atol=1e-6
        )
    )

    # HBM-DMA gather path, multiple blocks: exercises priming, cross-step
    # prefetch, and padding-row skipping in the last block.
    ids_dma = jax.random.randint(k_m2, (40,), 0, 32, dtype=jnp.int32)
    y_dma2 = jax.block_until_ready(
        embedding_lookup(
            model.tables["paper"], ids_dma, force_dma_gather=True, block_rows=16
        )
    )
    ok = ok and bool(
        jnp.allclose(y_dma2, jnp.take(model.tables["paper"], ids_dma, axis=0), atol=1e-6)
    )

    if ok:
        print("KERNEL_OK")
    else:
        raise SystemExit("mismatch vs reference")
</pallas_src>

<mosaic_0001>
module attributes {stable_mosaic.version = 11 : i64} {
  func.func @_resident_gather_kernel(%arg0: i32, %arg1: memref<16xi32, #tpu.memory_space<smem>>, %arg2: memref<16x128xf32, #tpu.memory_space<any>>, %arg3: memref<16x128xf32, #tpu.memory_space<vmem>>, %arg4: memref<16x128xf32, #tpu.memory_space<vmem>>, %arg5: memref<1x!tpu.dma_semaphore, #tpu.memory_space<semaphore_mem>>) attributes {dimension_semantics = [#tpu.dimension_semantics<arbitrary>], iteration_bounds = array<i64: 1>, scalar_prefetch = 1 : i64, scratch_operands = 2 : i64, tpu.core_type = #tpu.core_type<tc>, window_params = [{}, {transform_indices = @transform_1, window_bounds = array<i64: 16, 128>}]} {
    %c0_i32 = arith.constant 0 : i32
    %0 = arith.cmpi eq, %arg0, %c0_i32 : i32
    %1 = arith.extui %0 : i1 to i32
    %c0_i32_0 = arith.constant 0 : i32
    %2 = arith.cmpi ne, %1, %c0_i32_0 : i32
    scf.if %2 {
      %c0_i32_34 = arith.constant 0 : i32
      %100 = tpu.memref_slice %arg5[%c0_i32_34] : memref<1x!tpu.dma_semaphore, #tpu.memory_space<semaphore_mem>> -> memref<1x!tpu.dma_semaphore, #tpu.memory_space<semaphore_mem>>
      %101 = tpu.memref_squeeze %100 : memref<1x!tpu.dma_semaphore, #tpu.memory_space<semaphore_mem>> -> memref<!tpu.dma_semaphore, #tpu.memory_space<semaphore_mem>>
      tpu.enqueue_dma source(%arg2 : memref<16x128xf32, #tpu.memory_space<any>>) target(%arg4 : memref<16x128xf32, #tpu.memory_space<vmem>>) target_semaphore(%101 : memref<!tpu.dma_semaphore, #tpu.memory_space<semaphore_mem>>)
      %c0_i32_35 = arith.constant 0 : i32
      %102 = tpu.memref_slice %arg5[%c0_i32_35] : memref<1x!tpu.dma_semaphore, #tpu.memory_space<semaphore_mem>> -> memref<1x!tpu.dma_semaphore, #tpu.memory_space<semaphore_mem>>
      %103 = tpu.memref_squeeze %102 : memref<1x!tpu.dma_semaphore, #tpu.memory_space<semaphore_mem>> -> memref<!tpu.dma_semaphore, #tpu.memory_space<semaphore_mem>>
      tpu.wait_dma2 semaphore(%103 : memref<!tpu.dma_semaphore, #tpu.memory_space<semaphore_mem>>) src(%arg2 : memref<16x128xf32, #tpu.memory_space<any>>) dst(%arg4 : memref<16x128xf32, #tpu.memory_space<vmem>>)
    } else {
    }
    %c16_i32 = arith.constant 16 : i32
    %3 = arith.muli %arg0, %c16_i32 : i32
    %c0_i32_1 = arith.constant 0 : i32
    %4 = arith.addi %3, %c0_i32_1 : i32
    %5 = arith.index_cast %4 : i32 to index
    %6 = memref.load %arg1[%5] : memref<16xi32, #tpu.memory_space<smem>>
    %7 = arith.index_cast %6 : i32 to index
    %c0 = arith.constant 0 : index
    %8 = vector.load %arg4[%7, %c0] : memref<16x128xf32, #tpu.memory_space<vmem>>, vector<1x128xf32>
    %c0_2 = arith.constant 0 : index
    %c0_3 = arith.constant 0 : index
    %9 = vector.load %arg3[%c0_2, %c0_3] : memref<16x128xf32, #tpu.memory_space<vmem>>, vector<1x128xf32>
    tpu.vector_store %arg3[%c0_2, %c0_3], %8 {strides = array<i32>} : memref<16x128xf32, #tpu.memory_space<vmem>>, vector<1x128xf32>,
    %c1_i32 = arith.constant 1 : i32
    %10 = arith.addi %3, %c1_i32 : i32
    %11 = arith.index_cast %10 : i32 to index
    %12 = memref.load %arg1[%11] : memref<16xi32, #tpu.memory_space<smem>>
    %13 = arith.index_cast %12 : i32 to index
    %c0_4 = arith.constant 0 : index
    %14 = vector.load %arg4[%13, %c0_4] : memref<16x128xf32, #tpu.memory_space<vmem>>, vector<1x128xf32>
    %c1 = arith.constant 1 : index
    %c0_5 = arith.constant 0 : index
    %15 = vector.load %arg3[%c1, %c0_5] : memref<16x128xf32, #tpu.memory_space<vmem>>, vector<1x128xf32>
    tpu.vector_store %arg3[%c1, %c0_5], %14 {strides = array<i32>} : memref<16x128xf32, #tpu.memory_space<vmem>>, vector<1x128xf32>,
    %c2_i32 = arith.constant 2 : i32
    %16 = arith.addi %3, %c2_i32 : i32
    %17 = arith.index_cast %16 : i32 to index
    %18 = memref.load %arg1[%17] : memref<16xi32, #tpu.memory_space<smem>>
    %19 = arith.index_cast %18 : i32 to index
    %c0_6 = arith.constant 0 : index
    %20 = vector.load %arg4[%19, %c0_6] : memref<16x128xf32, #tpu.memory_space<vmem>>, vector<1x128xf32>
    %c2 = arith.constant 2 : index
    %c0_7 = arith.constant 0 : index
    %21 = vector.load %arg3[%c2, %c0_7] : memref<16x128xf32, #tpu.memory_space<vmem>>, vector<1x128xf32>
    tpu.vector_store %arg3[%c2, %c0_7], %20 {strides = array<i32>} : memref<16x128xf32, #tpu.memory_space<vmem>>, vector<1x128xf32>,
    %c3_i32 = arith.constant 3 : i32
    %22 = arith.addi %3, %c3_i32 : i32
    %23 = arith.index_cast %22 : i32 to index
    %24 = memref.load %arg1[%23] : memref<16xi32, #tpu.memory_space<smem>>
    %25 = arith.index_cast %24 : i32 to index
    %c0_8 = arith.constant 0 : index
    %26 = vector.load %arg4[%25, %c0_8] : memref<16x128xf32, #tpu.memory_space<vmem>>, vector<1x128xf32>
    %c3 = arith.constant 3 : index
    %c0_9 = arith.constant 0 : index
    %27 = vector.load %arg3[%c3, %c0_9] : memref<16x128xf32, #tpu.memory_space<vmem>>, vector<1x128xf32>
    tpu.vector_store %arg3[%c3, %c0_9], %26 {strides = array<i32>} : memref<16x128xf32, #tpu.memory_space<vmem>>, vector<1x128xf32>,
    %c4_i32 = arith.constant 4 : i32
    %28 = arith.addi %3, %c4_i32 : i32
    %29 = arith.index_cast %28 : i32 to index
    %30 = memref.load %arg1[%29] : memref<16xi32, #tpu.memory_space<smem>>
    %31 = arith.index_cast %30 : i32 to index
    %c0_10 = arith.constant 0 : index
    %32 = vector.load %arg4[%31, %c0_10] : memref<16x128xf32, #tpu.memory_space<vmem>>, vector<1x128xf32>
    %c4 = arith.constant 4 : index
    %c0_11 = arith.constant 0 : index
    %33 = vector.load %arg3[%c4, %c0_11] : memref<16x128xf32, #tpu.memory_space<vmem>>, vector<1x128xf32>
    tpu.vector_store %arg3[%c4, %c0_11], %32 {strides = array<i32>} : memref<16x128xf32, #tpu.memory_space<vmem>>, vector<1x128xf32>,
    %c5_i32 = arith.constant 5 : i32
    %34 = arith.addi %3, %c5_i32 : i32
    %35 = arith.index_cast %34 : i32 to index
    %36 = memref.load %arg1[%35] : memref<16xi32, #tpu.memory_space<smem>>
    %37 = arith.index_cast %36 : i32 to index
    %c0_12 = arith.constant 0 : index
    %38 = vector.load %arg4[%37, %c0_12] : memref<16x128xf32, #tpu.memory_space<vmem>>, vector<1x128xf32>
    %c5 = arith.constant 5 : index
    %c0_13 = arith.constant 0 : index
    %39 = vector.load %arg3[%c5, %c0_13] : memref<16x128xf32, #tpu.memory_space<vmem>>, vector<1x128xf32>
    tpu.vector_store %arg3[%c5, %c0_13], %38 {strides = array<i32>} : memref<16x128xf32, #tpu.memory_space<vmem>>, vector<1x128xf32>,
    %c6_i32 = arith.constant 6 : i32
    %40 = arith.addi %3, %c6_i32 : i32
    %41 = arith.index_cast %40 : i32 to index
    %42 = memref.load %arg1[%41] : memref<16xi32, #tpu.memory_space<smem>>
    %43 = arith.index_cast %42 : i32 to index
    %c0_14 = arith.constant 0 : index
    %44 = vector.load %arg4[%43, %c0_14] : memref<16x128xf32, #tpu.memory_space<vmem>>, vector<1x128xf32>
    %c6 = arith.constant 6 : index
    %c0_15 = arith.constant 0 : index
    %45 = vector.load %arg3[%c6, %c0_15] : memref<16x128xf32, #tpu.memory_space<vmem>>, vector<1x128xf32>
    tpu.vector_store %arg3[%c6, %c0_15], %44 {strides = array<i32>} : memref<16x128xf32, #tpu.memory_space<vmem>>, vector<1x128xf32>,
    %c7_i32 = arith.constant 7 : i32
    %46 = arith.addi %3, %c7_i32 : i32
    %47 = arith.index_cast %46 : i32 to index
    %48 = memref.load %arg1[%47] : memref<16xi32, #tpu.memory_space<smem>>
    %49 = arith.index_cast %48 : i32 to index
    %c0_16 = arith.constant 0 : index
    %50 = vector.load %arg4[%49, %c0_16] : memref<16x128xf32, #tpu.memory_space<vmem>>, vector<1x128xf32>
    %c7 = arith.constant 7 : index
    %c0_17 = arith.constant 0 : index
    %51 = vector.load %arg3[%c7, %c0_17] : memref<16x128xf32, #tpu.memory_space<vmem>>, vector<1x128xf32>
    tpu.vector_store %arg3[%c7, %c0_17], %50 {strides = array<i32>} : memref<16x128xf32, #tpu.memory_space<vmem>>, vector<1x128xf32>,
    %c8_i32 = arith.constant 8 : i32
    %52 = arith.addi %3, %c8_i32 : i32
    %53 = arith.index_cast %52 : i32 to index
    %54 = memref.load %arg1[%53] : memref<16xi32, #tpu.memory_space<smem>>
    %55 = arith.index_cast %54 : i32 to index
    %c0_18 = arith.constant 0 : index
    %56 = vector.load %arg4[%55, %c0_18] : memref<16x128xf32, #tpu.memory_space<vmem>>, vector<1x128xf32>
    %c8 = arith.constant 8 : index
    %c0_19 = arith.constant 0 : index
    %57 = vector.load %arg3[%c8, %c0_19] : memref<16x128xf32, #tpu.memory_space<vmem>>, vector<1x128xf32>
    tpu.vector_store %arg3[%c8, %c0_19], %56 {strides = array<i32>} : memref<16x128xf32, #tpu.memory_space<vmem>>, vector<1x128xf32>,
    %c9_i32 = arith.constant 9 : i32
    %58 = arith.addi %3, %c9_i32 : i32
    %59 = arith.index_cast %58 : i32 to index
    %60 = memref.load %arg1[%59] : memref<16xi32, #tpu.memory_space<smem>>
    %61 = arith.index_cast %60 : i32 to index
    %c0_20 = arith.constant 0 : index
    %62 = vector.load %arg4[%61, %c0_20] : memref<16x128xf32, #tpu.memory_space<vmem>>, vector<1x128xf32>
    %c9 = arith.constant 9 : index
    %c0_21 = arith.constant 0 : index
    %63 = vector.load %arg3[%c9, %c0_21] : memref<16x128xf32, #tpu.memory_space<vmem>>, vector<1x128xf32>
    tpu.vector_store %arg3[%c9, %c0_21], %62 {strides = array<i32>} : memref<16x128xf32, #tpu.memory_space<vmem>>, vector<1x128xf32>,
    %c10_i32 = arith.constant 10 : i32
    %64 = arith.addi %3, %c10_i32 : i32
    %65 = arith.index_cast %64 : i32 to index
    %66 = memref.load %arg1[%65] : memref<16xi32, #tpu.memory_space<smem>>
    %67 = arith.index_cast %66 : i32 to index
    %c0_22 = arith.constant 0 : index
    %68 = vector.load %arg4[%67, %c0_22] : memref<16x128xf32, #tpu.memory_space<vmem>>, vector<1x128xf32>
    %c10 = arith.constant 10 : index
    %c0_23 = arith.constant 0 : index
    %69 = vector.load %arg3[%c10, %c0_23] : memref<16x128xf32, #tpu.memory_space<vmem>>, vector<1x128xf32>
    tpu.vector_store %arg3[%c10, %c0_23], %68 {strides = array<i32>} : memref<16x128xf32, #tpu.memory_space<vmem>>, vector<1x128xf32>,
    %c11_i32 = arith.constant 11 : i32
    %70 = arith.addi %3, %c11_i32 : i32
    %71 = arith.index_cast %70 : i32 to index
    %72 = memref.load %arg1[%71] : memref<16xi32, #tpu.memory_space<smem>>
    %73 = arith.index_cast %72 : i32 to index
    %c0_24 = arith.constant 0 : index
    %74 = vector.load %arg4[%73, %c0_24] : memref<16x128xf32, #tpu.memory_space<vmem>>, vector<1x128xf32>
    %c11 = arith.constant 11 : index
    %c0_25 = arith.constant 0 : index
    %75 = vector.load %arg3[%c11, %c0_25] : memref<16x128xf32, #tpu.memory_space<vmem>>, vector<1x128xf32>
    tpu.vector_store %arg3[%c11, %c0_25], %74 {strides = array<i32>} : memref<16x128xf32, #tpu.memory_space<vmem>>, vector<1x128xf32>,
    %c12_i32 = arith.constant 12 : i32
    %76 = arith.addi %3, %c12_i32 : i32
    %77 = arith.index_cast %76 : i32 to index
    %78 = memref.load %arg1[%77] : memref<16xi32, #tpu.memory_space<smem>>
    %79 = arith.index_cast %78 : i32 to index
    %c0_26 = arith.constant 0 : index
    %80 = vector.load %arg4[%79, %c0_26] : memref<16x128xf32, #tpu.memory_space<vmem>>, vector<1x128xf32>
    %c12 = arith.constant 12 : index
    %c0_27 = arith.constant 0 : index
    %81 = vector.load %arg3[%c12, %c0_27] : memref<16x128xf32, #tpu.memory_space<vmem>>, vector<1x128xf32>
    tpu.vector_store %arg3[%c12, %c0_27], %80 {strides = array<i32>} : memref<16x128xf32, #tpu.memory_space<vmem>>, vector<1x128xf32>,
    %c13_i32 = arith.constant 13 : i32
    %82 = arith.addi %3, %c13_i32 : i32
    %83 = arith.index_cast %82 : i32 to index
    %84 = memref.load %arg1[%83] : memref<16xi32, #tpu.memory_space<smem>>
    %85 = arith.index_cast %84 : i32 to index
    %c0_28 = arith.constant 0 : index
    %86 = vector.load %arg4[%85, %c0_28] : memref<16x128xf32, #tpu.memory_space<vmem>>, vector<1x128xf32>
    %c13 = arith.constant 13 : index
    %c0_29 = arith.constant 0 : index
    %87 = vector.load %arg3[%c13, %c0_29] : memref<16x128xf32, #tpu.memory_space<vmem>>, vector<1x128xf32>
    tpu.vector_store %arg3[%c13, %c0_29], %86 {strides = array<i32>} : memref<16x128xf32, #tpu.memory_space<vmem>>, vector<1x128xf32>,
    %c14_i32 = arith.constant 14 : i32
    %88 = arith.addi %3, %c14_i32 : i32
    %89 = arith.index_cast %88 : i32 to index
    %90 = memref.load %arg1[%89] : memref<16xi32, #tpu.memory_space<smem>>
    %91 = arith.index_cast %90 : i32 to index
    %c0_30 = arith.constant 0 : index
    %92 = vector.load %arg4[%91, %c0_30] : memref<16x128xf32, #tpu.memory_space<vmem>>, vector<1x128xf32>
    %c14 = arith.constant 14 : index
    %c0_31 = arith.constant 0 : index
    %93 = vector.load %arg3[%c14, %c0_31] : memref<16x128xf32, #tpu.memory_space<vmem>>, vector<1x128xf32>
    tpu.vector_store %arg3[%c14, %c0_31], %92 {strides = array<i32>} : memref<16x128xf32, #tpu.memory_space<vmem>>, vector<1x128xf32>,
    %c15_i32 = arith.constant 15 : i32
    %94 = arith.addi %3, %c15_i32 : i32
    %95 = arith.index_cast %94 : i32 to index
    %96 = memref.load %arg1[%95] : memref<16xi32, #tpu.memory_space<smem>>
    %97 = arith.index_cast %96 : i32 to index
    %c0_32 = arith.constant 0 : index
    %98 = vector.load %arg4[%97, %c0_32] : memref<16x128xf32, #tpu.memory_space<vmem>>, vector<1x128xf32>
    %c15 = arith.constant 15 : index
    %c0_33 = arith.constant 0 : index
    %99 = vector.load %arg3[%c15, %c0_33] : memref<16x128xf32, #tpu.memory_space<vmem>>, vector<1x128xf32>
    tpu.vector_store %arg3[%c15, %c0_33], %98 {strides = array<i32>} : memref<16x128xf32, #tpu.memory_space<vmem>>, vector<1x128xf32>,
    return
  }
  func.func @transform_1(%arg0: i32, %arg1: memref<16xi32, #tpu.memory_space<smem>>) -> (i32, i32) {
    %c0_i32 = arith.constant 0 : i32
    %c0_i32_0 = arith.constant 0 : i32
    return %arg0, %c0_i32 : i32, i32
  }
}

</mosaic_0001>

<bundles_post_ra>
// kernel: tpu_custom_call.1
= control target key start
LH: loop header
LB: loop body
LE: loop exit
PB: predicated region body
PF: predicated region fallthrough
CT: control target
= control target key end

     0   :  { %s304_s0 = inlined_call_operand.hbm [shape: s32[16], index: 0, kind: input, shape index: {}]   ;;  %s305_s1 = inlined_call_operand.hbm [shape: f32[16,128], index: 1, kind: input, shape index: {}]   ;;  %s306_s2 = inlined_call_operand.hbm [shape: f32[16,128], index: 2, kind: output, shape index: {}]  }
   0x1   :  { %s169_s11 = scalar_lea.hbm %s304_s0, 16 }
   0x2   :  { %p170_p0 = scmp.ne.s32.totalorder %s304_s0, %s169_s11  ;;  %p173_p1 = scmp.lt.u32.totalorder %s169_s11, %s304_s0 }
   0x4   :  { %p175_p2 = pnand %p173_p1, %p170_p0 }
   0x6   :  { %178 = shalt.err (!%p175_p2)  }
   0x7   :  { %s229_s16 = smov [#allocation5]  }
   0x8   :  { %8 = dma.hbm_to_smem %s304_s0, 16, %s229_s16, [#allocation4] }
   0x9   :  { %223 = dma.done.wait [#allocation4], 16 }
   0xa   :  { %224 = vsyncadd [#allocation4], 4294967280 }
   0xb   :  { %10 = sfence }
   0xc   :  { %11 = vsyncpa [#allocation7], 0  ;;  %s230_s19 = smov [#allocation2]   ;;  %s179_s23 = scalar_lea.hbm %s305_s1, 256 }
   0xd   :  { %s23_s20 = sshll.u32 %s230_s19, 4  ;;  %p180_p3 = scmp.ne.s32.totalorder %s305_s1, %s179_s23  ;;  %s24_s20 = int_to_ptr.vmem [resolvable:$true] %s23_s20 }
   0xe   :  { %p183_p4 = scmp.lt.u32.totalorder %s179_s23, %s305_s1 }
  0x10   :  { %p185_p5 = pnand %p183_p4, %p180_p3 }
  0x12   :  { %188 = shalt.err (!%p185_p5)  }
  0x13   :  { %s189_s0 = scalar_lea.vmem %s24_s20, 256  ;;  %p194_p7 = scmp.lt.s32.totalorder %s24_s20, %s24_s20 }
  0x14   :  { %p190_p6 = scmp.ne.s32.totalorder %s24_s20, %s189_s0  ;;  %p195_p8 = scmp.lt.s32.totalorder %s189_s0, %s189_s0 }
  0x16   :  { %p196_p9 = por %p195_p8, %p194_p7 }
  0x18   :  { %p197_p10 = pnand %p196_p9, %p190_p6 }
  0x1a   :  { %200 = shalt.err (!%p197_p10)  }
  0x1b   :  { %26 = dma.hbm_to_vmem [thread:$0]  %s305_s1, 256, %s24_s20, [#allocation3] }
  0x1c   :  { %225 = dma.done.wait [#allocation3], 256 }
  0x1d   :  { %226 = vsyncadd [#allocation3], 4294967040  ;;  %s31_s30 = sld [smem:[#allocation5]]  ;;  %s148_s3 = sld [smem:[#allocation5 + $0x1]] }
  0x1e   :  { %s149_s4 = sld [smem:[#allocation5 + $0x2]]  ;;  %s150_s5 = sld [smem:[#allocation5 + $0x3]] }
  0x1f   :  { %s151_s6 = sld [smem:[#allocation5 + $0x4]]  ;;  %s152_s7 = sld [smem:[#allocation5 + $0x5]] }
  0x20   :  { %s153_s8 = sld [smem:[#allocation5 + $0x6]]  ;;  %s154_s9 = sld [smem:[#allocation5 + $0x7]] }
  0x21   :  { %s273_s10 = sld [smem:[#allocation5 + $0x8]]  ;;  %s275_s11 = sld [smem:[#allocation5 + $0x9]] }
  0x22   :  { %s277_s12 = sld [smem:[#allocation5 + $0xa]]  ;;  %s279_s13 = sld [smem:[#allocation5 + $0xb]] }
  0x23   :  { %s32_s14 = scalar_lea.vmem [#allocation2], %s31_s30  ;;  %s37_s1 = scalar_lea.vmem [#allocation2], %s148_s3 }
  0x24   :  { %v33_v0 = vld [vmem:[%s32_s14] sm:$0x1]  ;;  %s42_s15 = scalar_lea.vmem [#allocation2], %s149_s4  ;;  %s47_s16 = scalar_lea.vmem [#allocation2], %s150_s5 }
  0x25   :  { %v38_v1 = vld [vmem:[%s37_s1] sm:$0x1]  ;;  %34 = vst [vmem:[#allocation6] sm:$0x1] %v33_v0  ;;  %s52_s17 = scalar_lea.vmem [#allocation2], %s151_s6  ;;  %s57_s18 = scalar_lea.vmem [#allocation2], %s152_s7 }
  0x26   :  { %39 = vst [vmem:[#allocation6 + $0x1] sm:$0x1] %v38_v1  ;;  %v43_v2 = vld [vmem:[%s42_s15] sm:$0x1]  ;;  %s62_s19 = scalar_lea.vmem [#allocation2], %s153_s8  ;;  %s67_s20 = scalar_lea.vmem [#allocation2], %s154_s9 }
  0x27   :  { %v48_v3 = vld [vmem:[%s47_s16] sm:$0x1]  ;;  %44 = vst [vmem:[#allocation6 + $0x2] sm:$0x1] %v43_v2  ;;  %s72_s21 = scalar_lea.vmem [#allocation2], %s273_s10  ;;  %s77_s22 = scalar_lea.vmem [#allocation2], %s275_s11 }
  0x28   :  { %49 = vst [vmem:[#allocation6 + $0x3] sm:$0x1] %v48_v3  ;;  %v53_v4 = vld [vmem:[%s52_s17] sm:$0x1]  ;;  %s82_s23 = scalar_lea.vmem [#allocation2], %s277_s12  ;;  %s87_s24 = scalar_lea.vmem [#allocation2], %s279_s13 }
  0x29   :  { %v58_v5 = vld [vmem:[%s57_s18] sm:$0x1]  ;;  %54 = vst [vmem:[#allocation6 + $0x4] sm:$0x1] %v53_v4  ;;  %s159_s25 = sld [smem:[#allocation5 + $0xc]]  ;;  %s160_s26 = sld [smem:[#allocation5 + $0xd]] }
  0x2a   :  { %59 = vst [vmem:[#allocation6 + $0x5] sm:$0x1] %v58_v5  ;;  %v63_v6 = vld [vmem:[%s62_s19] sm:$0x1]  ;;  %s161_s27 = sld [smem:[#allocation5 + $0xe]]  ;;  %s162_s0 = sld [smem:[#allocation5 + $0xf]] }
  0x2b   :  { %v68_v7 = vld [vmem:[%s67_s20] sm:$0x1]  ;;  %64 = vst [vmem:[#allocation6 + $0x6] sm:$0x1] %v63_v6  ;;  %s231_s28 = smov [#allocation6]  }
  0x2c   :  { %69 = vst [vmem:[#allocation6 + $0x7] sm:$0x1] %v68_v7  ;;  %v73_v8 = vld [vmem:[%s72_s21] sm:$0x1]  ;;  %s115_s29 = sshll.u32 %s231_s28, 4  ;;  %s285_s29 = int_to_ptr.vmem [resolvable:$true] %s115_s29 }
  0x2d   :  { %v78_v9 = vld [vmem:[%s77_s22] sm:$0x1]  ;;  %74 = vst [vmem:[#allocation6 + $0x8] sm:$0x1] %v73_v8  ;;  %s201_s6 = scalar_lea.vmem %s285_s29, 256  ;;  %p206_p12 = scmp.lt.s32.totalorder %s285_s29, %s285_s29 }
  0x2e   :  { %79 = vst [vmem:[#allocation6 + $0x9] sm:$0x1] %v78_v9  ;;  %v83_v10 = vld [vmem:[%s82_s23] sm:$0x1]  ;;  %p202_p11 = scmp.ne.s32.totalorder %s285_s29, %s201_s6  ;;  %p207_p13 = scmp.lt.s32.totalorder %s201_s6, %s201_s6 }
  0x2f   :  { %v88_v11 = vld [vmem:[%s87_s24] sm:$0x1]  ;;  %84 = vst [vmem:[#allocation6 + $0xa] sm:$0x1] %v83_v10  ;;  %s92_s30 = scalar_lea.vmem [#allocation2], %s159_s25  ;;  %s97_s3 = scalar_lea.vmem [#allocation2], %s160_s26 }
  0x30   :  { %89 = vst [vmem:[#allocation6 + $0xb] sm:$0x1] %v88_v11  ;;  %v93_v12 = vld [vmem:[%s92_s30] sm:$0x1]  ;;  %s102_s4 = scalar_lea.vmem [#allocation2], %s161_s27  ;;  %s107_s5 = scalar_lea.vmem [#allocation2], %s162_s0 }
  0x31   :  { %94 = vst [vmem:[#allocation6 + $0xc] sm:$0x1] %v93_v12  ;;  %v98_v13 = vld [vmem:[%s97_s3] sm:$0x1]  ;;  %p208_p0 = por %p207_p13, %p206_p12 }
  0x32   :  { %v103_v14 = vld [vmem:[%s102_s4] sm:$0x1]  ;;  %99 = vst [vmem:[#allocation6 + $0xd] sm:$0x1] %v98_v13 }
  0x33   :  { %104 = vst [vmem:[#allocation6 + $0xe] sm:$0x1] %v103_v14  ;;  %v108_v15 = vld [vmem:[%s107_s5] sm:$0x1]  ;;  %p209_p1 = pnand %p208_p0, %p202_p11 }
  0x34   :  { %109 = vst [vmem:[#allocation6 + $0xf] sm:$0x1] %v108_v15 }
  0x35   :  { %212 = shalt.err (!%p209_p1)
}
  0x36   :  { %s213_s9 = scalar_lea.hbm %s306_s2, 256 }
  0x37   :  { %p214_p2 = scmp.ne.s32.totalorder %s306_s2, %s213_s9  ;;  %p217_p3 = scmp.lt.u32.totalorder %s213_s9, %s306_s2 }
  0x39   :  { %p219_p4 = pnand %p217_p3, %p214_p2 }
  0x3b   :  { %222 = shalt.err (!%p219_p4)
}
  0x3c   :  { %s232_s14 = smov 128   ;;  %s233_s1 = smov 8  }
  0x3d   :  { %121 = dma.vmem_to_hbm [thread:$0]  %s285_s29, 256, %s306_s2, [#allocation7], %s232_s14, %s232_s14, %s233_s1  }
  0x3e   :  { %227 = dma.done.wait [#allocation7], 256  }
  0x3f   :  { %228 = vsyncadd [#allocation7], 4294967040 }
  0x40   :  { %125 = vsyncpa [#allocation7], 1 }
  0x41   :  { %126 = vsyncmov [#allocation3] }
  0x44   :  { %s127_s17 = vpop.sfrf %126 }
  0x45   :  { %p163_p5 = scmp.ne.s32.totalorder %s127_s17, 0 }
  0x47   :  { %131 = shalt.err (%p163_p5)  }

</bundles_post_ra>
